<compile_context>
chip_gen: v5e
topology: v5e:2x2
jax: 0.10.0
libtpu: 0.0.40
codegen_flags: <defaults>
</compile_context>

<pallas_src>
import jax
import jax.numpy as jnp
from jax.experimental import pallas as pl
from jax.experimental.pallas import tpu as pltpu


def _simmask_kernel(min_sim_ref, sim_ref, out_ref):
    # min_sim_ref: SMEM (1,) scalar threshold (f32)
    # sim_ref:     VMEM (tm, tn) tile, native input dtype
    # out_ref:     VMEM (tm, tn) tile, out_dtype (f32 by default)
    thr = min_sim_ref[0]
    s = sim_ref[...].astype(jnp.float32)           # widen in-register (VPU only)
    out = jnp.where(s < thr, jnp.float32(jnp.inf), jnp.float32(0.0))
    out_ref[...] = out.astype(out_ref.dtype)


def _pick_tile(dim: int, pref: int, align: int) -> int:
    """Largest tile <= pref that is a multiple of `align`, or the full dim."""
    if dim <= pref:
        return dim                                  # full extent: always legal
    return max((pref // align) * align, align)


def _lane_dense_layout(total: int, max_cols: int = 4096):
    """Largest multiple-of-128 column count <= max_cols that divides `total`."""
    best = None
    for c in range(128, max_cols + 1, 128):
        if total % c == 0:
            best = c
    return None if best is None else (total // best, best)


def sim_mask(sim_matrix: jax.Array, min_sim: jax.Array, *,
             tm_pref: int = 256, tn_pref: int = 4096,
             out_dtype=jnp.float32, donate_input: bool = False) -> jax.Array:
    """Pallas implementation of SimMask.forward.

    sim_matrix: (b, n) float array (any float dtype, streamed natively).
    min_sim:    scalar threshold (the learnable parameter).
    Returns (b, n) out_dtype array with +inf where sim < min_sim, else 0.0.
    """
    b, n = sim_matrix.shape
    x = sim_matrix
    rows, cols = b, n

    # Narrow / unaligned last dim: re-view the contiguous array as a
    # lane-dense slab (pure elementwise op, so any reshape is semantics-free).
    if cols % 128 != 0 or cols < 512:
        layout = _lane_dense_layout(b * n, max_cols=tn_pref)
        if layout is not None and layout[1] != cols:
            rows, cols = layout
            x = x.reshape(rows, cols)

    tm = _pick_tile(rows, tm_pref, 8)               # sublane-aligned
    tn = _pick_tile(cols, tn_pref, 128)             # lane-dense stores
    grid_m = pl.cdiv(rows, tm)
    grid_n = pl.cdiv(cols, tn)

    # v7x megacore: if everything collapsed into a single program but the
    # array is big enough that a split is worthwhile (>= 2 MiB of output),
    # cut one axis so both TensorCores get work.  (No effect on v5e/v6e.)
    if grid_m * grid_n == 1 and rows * cols * 4 >= (2 << 20):
        row_units, col_units = rows // 8, cols // 128
        if row_units >= 8 or (row_units >= 2 and row_units >= col_units):
            pieces = min(8, row_units)              # contiguous row blocks
            tm = pl.cdiv(row_units, pieces) * 8
            grid_m = pl.cdiv(rows, tm)
        elif col_units >= 2:
            pieces = min(8, col_units)
            tn = pl.cdiv(col_units, pieces) * 128
            grid_n = pl.cdiv(cols, tn)

    thr = jnp.asarray(min_sim, dtype=jnp.float32).reshape((1,))

    out_itemsize = jnp.dtype(out_dtype).itemsize
    in_bytes = sim_matrix.size * sim_matrix.dtype.itemsize
    out_bytes = sim_matrix.size * out_itemsize
    cost = pl.CostEstimate(flops=2 * sim_matrix.size, transcendentals=0,
                           bytes_accessed=in_bytes + out_bytes)

    # Enough for double-buffered in+out tiles plus headroom; capped at 48 MiB
    # so we stay inside v7x's 64 MiB physical VMEM.
    tile_bytes = tm * tn * (sim_matrix.dtype.itemsize + out_itemsize)
    vmem_limit = int(min(48 << 20, max(32 << 20, 3 * tile_bytes)))

    alias = {}
    if donate_input and sim_matrix.dtype == jnp.dtype(out_dtype) and rows == b:
        alias = {1: 0}                              # reuse sim buffer for output

    out = pl.pallas_call(
        _simmask_kernel,
        out_shape=jax.ShapeDtypeStruct((rows, cols), out_dtype),
        grid=(grid_m, grid_n),
        in_specs=[
            pl.BlockSpec(memory_space=pltpu.SMEM),            # threshold scalar
            # TODO(synk): sweep pipeline_mode=pl.Buffered(3) here (expected 0-5%).
            pl.BlockSpec((tm, tn), lambda i, j: (i, j)),       # sim tile
        ],
        out_specs=pl.BlockSpec((tm, tn), lambda i, j: (i, j)),  # mask tile
        compiler_params=pltpu.CompilerParams(
            dimension_semantics=("parallel", "parallel"),
            vmem_limit_bytes=vmem_limit),
        cost_estimate=cost,
        input_output_aliases=alias,
    )(thr, x)

    return out.reshape(b, n)


if __name__ == "__main__":
    key = jax.random.PRNGKey(0)

    # Small shape: batch of 8 rows, 128 similarity entries per row.
    b, n = 8, 128
    sim = jax.random.normal(key, (b, n), dtype=jnp.float32)

    # Deterministic parameter init, matching nn.Parameter(torch.tensor(0.)).
    min_sim = jnp.zeros((), dtype=jnp.float32)

    out = sim_mask(sim, min_sim)
    out = jax.block_until_ready(out)

    # Reference check against plain-JAX semantics of the PyTorch forward.
    ref = jnp.where(sim < min_sim, jnp.inf, 0.0).astype(jnp.float32)
    assert out.shape == (b, n) and out.dtype == jnp.float32
    assert bool(jnp.all(out == ref))

    print("KERNEL_OK")
</pallas_src>

<mosaic_0001>
module attributes {stable_mosaic.version = 11 : i64} {
  func.func @_simmask_kernel(%arg0: i32, %arg1: i32, %arg2: memref<1xf32, #tpu.memory_space<smem>>, %arg3: memref<1x1024xf32, #tpu.memory_space<vmem>>, %arg4: memref<1x1024xf32, #tpu.memory_space<vmem>>) attributes {dimension_semantics = [#tpu.dimension_semantics<parallel>, #tpu.dimension_semantics<parallel>], iteration_bounds = array<i64: 1, 1>, scalar_prefetch = 0 : i64, scratch_operands = 0 : i64, tpu.core_type = #tpu.core_type<tc>, window_params = [{transform_indices = @transform_0, window_bounds = array<i64: 1>}, {transform_indices = @transform_1, window_bounds = array<i64: 1, 1024>}, {transform_indices = @transform_2, window_bounds = array<i64: 1, 1024>}]} {
    %c0 = arith.constant 0 : index
    %0 = memref.load %arg2[%c0] : memref<1xf32, #tpu.memory_space<smem>>
    %c0_0 = arith.constant 0 : index
    %c0_1 = arith.constant 0 : index
    %1 = vector.load %arg3[%c0_0, %c0_1] : memref<1x1024xf32, #tpu.memory_space<vmem>>, vector<1x1024xf32>
    %2 = vector.broadcast %0 : f32 to vector<1x1024xf32>
    %3 = arith.cmpf olt, %1, %2 : vector<1x1024xf32>
    %cst = arith.constant 0x7F800000 : f32
    %cst_2 = arith.constant 0.000000e+00 : f32
    %4 = vector.broadcast %cst : f32 to vector<1x1024xf32>
    %5 = vector.broadcast %cst_2 : f32 to vector<1x1024xf32>
    %6 = arith.select %3, %4, %5 : vector<1x1024xi1>, vector<1x1024xf32>
    %c0_3 = arith.constant 0 : index
    %c0_4 = arith.constant 0 : index
    %7 = vector.load %arg4[%c0_3, %c0_4] : memref<1x1024xf32, #tpu.memory_space<vmem>>, vector<1x1024xf32>
    tpu.vector_store %arg4[%c0_3, %c0_4], %6 {strides = array<i32>} : memref<1x1024xf32, #tpu.memory_space<vmem>>, vector<1x1024xf32>,
    return
  }
  func.func @transform_0(%arg0: i32, %arg1: i32) -> i32 {
    %c0_i32 = arith.constant 0 : i32
    %c0_i32_0 = arith.constant 0 : i32
    return %c0_i32 : i32
  }
  func.func @transform_1(%arg0: i32, %arg1: i32) -> (i32, i32) {
    %c0_i32 = arith.constant 0 : i32
    return %arg0, %arg1 : i32, i32
  }
  func.func @transform_2(%arg0: i32, %arg1: i32) -> (i32, i32) {
    %c0_i32 = arith.constant 0 : i32
    return %arg0, %arg1 : i32, i32
  }
}

</mosaic_0001>

<bundles_post_ra>
// kernel: tpu_custom_call.1
= control target key start
LH: loop header
LB: loop body
LE: loop exit
PB: predicated region body
PF: predicated region fallthrough
CT: control target
= control target key end

     0   :  { %8 = vsyncpa [#allocation4], 0  ;;  %s132_s0 = inlined_call_operand.<no memory space> [shape: f32[1], index: 0, kind: input, shape index: {}]   ;;  %s133_s1 = inlined_call_operand.hbm [shape: f32[1,1024], index: 1, kind: input, shape index: {}]   ;;  %s134_s2 = inlined_call_operand.hbm [shape: f32[1,1024], index: 2, kind: output, shape index: {}]  }
   0x1   :  { %9 = vsyncpa [#allocation5], 0  ;;  %s17_s11 = sshll.u32 %s133_s1, 4  ;;  %s105_s12 = smov [#allocation3]   ;;  %s18_s11 = int_to_ptr.hbm [resolvable:$true] %s17_s11 }
   0x2   :  { %s19_s13 = sshll.u32 %s105_s12, 4  ;;  %s20_s13 = int_to_ptr.vmem [resolvable:$true] %s19_s13 }
   0x3   :  { %22 = dma.hbm_to_vmem [thread:$0]  %s18_s11, 128, %s20_s13, [#allocation4]  }
   0x4   :  { %101 = dma.done.wait [#allocation4], 128  }
   0x5   :  { %102 = vsyncadd [#allocation4], 4294967168  ;;  %v29_v0 = vstv %s132_s0  ;;  %s106_s16 = smov [#allocation6]   ;;  %s40_s20 = sshll.u32 %s134_s2, 4  ;;  %v28_v1 = vld [vmem:[#allocation3] sm:$0xff]  ;;  %v107_v2 = vmov 0.0   ;;  %s41_s20 = int_to_ptr.hbm [resolvable:$true] %s40_s20 }
   0x6   :  { %s38_s17 = sshll.u32 %s106_s16, 4  ;;  %vm30_vm0 = vcmp.lt.f32.partialorder %v28_v1, %v29_v0  ;;  %s39_s17 = int_to_ptr.vmem [resolvable:$true] %s38_s17 }
   0x7   :  { %v31_v3 = vsel %vm30_vm0, inf, %v107_v2 }
   0x8   :  { %32 = vst [vmem:[#allocation6] sm:$0xff] %v31_v3 }
   0x9   :  { %43 = dma.vmem_to_hbm [thread:$0]  %s39_s17, 128, %s41_s20, [#allocation5]  }
   0xa   :  { %103 = dma.done.wait [#allocation5], 128  }
   0xb   :  { %104 = vsyncadd [#allocation5], 4294967168 }
   0xc   :  { %48 = vsyncpa [#allocation4], 1 }
   0xd   :  { %49 = vsyncpa [#allocation5], 1 }

</bundles_post_ra>
